<compile_context>
chip_gen: v5e
topology: v5e:2x2
jax: 0.10.0
libtpu: 0.0.40
codegen_flags: <defaults>
</compile_context>

<pallas_src>
import math
import functools

import jax
import jax.numpy as jnp
from jax.experimental import pallas as pl
from jax.experimental.pallas import tpu as pltpu

EPS = 1e-6  # LayerNormalization eps (added to std, exactly as in the torch code)


def encoder_block_kernel(x_ref, bias_ref,
                         wqkv_ref, bqkv_ref, wo_ref, bo_ref,
                         w1_ref, b1_ref, w2_ref, b2_ref,
                         ln_ref, o_ref, *, n_heads):
    x = x_ref[...].astype(jnp.float32)            # (S, D) rows of this batch elem
    bias = bias_ref[0].astype(jnp.float32)        # (S, S) additive mask bias
    alpha = ln_ref[0]                             # scalar LN gain  (init = 1.0)
    beta = ln_ref[1]                              # scalar LN bias  (init = 0.0)

    S, D = x.shape
    H = n_heads
    dk = D // H
    scale = 1.0 / math.sqrt(dk)
    cdt = wqkv_ref.dtype                          # matmul compute dtype (bf16 or f32)

    def layer_norm(t):
        mean = jnp.mean(t, axis=-1, keepdims=True)
        # torch.Tensor.std uses the unbiased estimator (ddof = 1)
        var = jnp.sum((t - mean) ** 2, axis=-1, keepdims=True) * (1.0 / (D - 1))
        std = jnp.sqrt(var)
        return alpha * (t - mean) / (std + EPS) + beta

    # ---------------- residual connection 0: x + MHA(LN(x)) ----------------
    xn = layer_norm(x)                                                  # (S, D) f32
    # Single fused QKV projection; weights pre-packed per head [q_h | k_h | v_h].
    qkv = jnp.dot(xn.astype(cdt), wqkv_ref[...],
                  preferred_element_type=jnp.float32) + bqkv_ref[...]   # (S, 3D) f32

    # Head split: H contiguous 3*dk-lane slices stacked on a new leading dim.
    qkv_h = jnp.stack(
        [qkv[:, h * 3 * dk:(h + 1) * 3 * dk] for h in range(H)], axis=0)  # (H, S, 3dk)
    q = qkv_h[..., 0 * dk:1 * dk].astype(cdt)                           # (H, S, dk)
    k = qkv_h[..., 1 * dk:2 * dk].astype(cdt)
    v = qkv_h[..., 2 * dk:3 * dk].astype(cdt)

    # Head-batched attention: two 3-D einsums on the MXU (f32 accumulation).
    scores = jnp.einsum('nqd,nkd->nqk', q, k,
                        preferred_element_type=jnp.float32) * scale     # (H, S, S)
    # (S, S) bias broadcasts over the head dim at the add -- no materialized
    # H-fold copy of the mask.
    scores = scores + bias
    scores = scores - jnp.max(scores, axis=-1, keepdims=True)
    p = jnp.exp(scores)
    denom = jnp.sum(p, axis=-1, keepdims=True)
    p = p * pl.reciprocal(denom, approx=True)                           # EUP, not VALU
    ctx = jnp.einsum('nqk,nkd->nqd', p.astype(cdt), v,
                     preferred_element_type=jnp.float32)                # (H, S, dk)

    # Merge heads back to (S, D) (lane order = head-major, dk-minor), then one
    # output projection.
    attn = jnp.concatenate([ctx[h] for h in range(H)], axis=-1)         # (S, D)
    attn = jnp.dot(attn.astype(cdt), wo_ref[...],
                   preferred_element_type=jnp.float32) + bo_ref[...]
    x1 = x + attn                                                       # dropout == identity

    # ---------------- residual connection 1: x1 + FFN(LN(x1)) ----------------
    xn2 = layer_norm(x1)
    h1 = jnp.dot(xn2.astype(cdt), w1_ref[...],
                 preferred_element_type=jnp.float32) + b1_ref[...]      # (S, F) f32
    h1 = jnp.maximum(h1, 0.0)                                           # relu (f32)
    ff = jnp.dot(h1.astype(cdt), w2_ref[...],
                 preferred_element_type=jnp.float32) + b2_ref[...]      # (S, D) f32
    o_ref[...] = (x1 + ff).astype(o_ref.dtype)


def prepare_params(params, n_heads, matmul_dtype=jnp.bfloat16):
    """One-time parameter prep: pack QKV per head and cast weights to the
    matmul compute dtype.  Run once, NOT per forward call."""
    D = params["wq"].shape[0]
    H = n_heads
    dk = D // H
    # Columns grouped per head as [q_h | k_h | v_h] so the kernel slices one
    # contiguous 3*dk block per head.
    wqkv = jnp.concatenate(
        [params["wq"].reshape(D, H, dk),
         params["wk"].reshape(D, H, dk),
         params["wv"].reshape(D, H, dk)], axis=2).reshape(D, 3 * D)
    bqkv = jnp.concatenate(
        [params["bq"].reshape(1, H, dk),
         params["bk"].reshape(1, H, dk),
         params["bv"].reshape(1, H, dk)], axis=2).reshape(1, 3 * D)
    return dict(
        wqkv=wqkv.astype(matmul_dtype),
        bqkv=bqkv.astype(jnp.float32),          # biases stay f32 (post-matmul add)
        wo=params["wo"].astype(matmul_dtype), bo=params["bo"].astype(jnp.float32),
        w1=params["w1"].astype(matmul_dtype), b1=params["b1"].astype(jnp.float32),
        w2=params["w2"].astype(matmul_dtype), b2=params["b2"].astype(jnp.float32),
        ln=params["ln"].astype(jnp.float32),
    )


def encoder_block(x, src_mask, prep, n_heads):
    """x: (B, S, D), src_mask: (B, 1, S, S) with 0 = masked.  prep from
    prepare_params()."""
    B, S, D = x.shape
    F = prep["w1"].shape[1]
    H = n_heads

    # Additive mask bias precomputed once per call (wrapper side): -1e9 where
    # mask == 0, else 0.  (For production S, pass this as bf16/int8 to halve
    # the second-largest HBM input; kept f32 here for exactness.)
    mask3 = src_mask.reshape(B, S, S)
    bias = jnp.where(mask3 == 0, -1e9, 0.0).astype(jnp.float32)

    x2d = x.reshape(B * S, D)                  # lane/sublane-dense activation slab
    kernel = functools.partial(encoder_block_kernel, n_heads=H)

    def wspec(shape):
        # Constant-index weight blocks: single-buffered (they never change), so
        # they do not double their VMEM footprint (matters on v7x's 64 MiB).
        return pl.BlockSpec(shape, lambda *_: (0,) * len(shape),
                            pipeline_mode=pl.Buffered(1))

    grid = (B,)                                # >= 2 steps: pipelining + v7x 2-TC
    in_specs = [
        pl.BlockSpec((S, D), lambda i: (i, 0)),           # rows of this batch elem
        pl.BlockSpec((1, S, S), lambda i: (i, 0, 0)),     # additive mask bias
        wspec((D, 3 * D)), wspec((1, 3 * D)),             # wqkv, bqkv
        wspec((D, D)), wspec((1, D)),                     # wo, bo
        wspec((D, F)), wspec((1, F)),                     # w1, b1
        wspec((F, D)), wspec((1, D)),                     # w2, b2
        pl.BlockSpec(memory_space=pltpu.MemorySpace.SMEM),  # LN [alpha, bias]
    ]
    out_spec = pl.BlockSpec((S, D), lambda i: (i, 0))

    out2d = pl.pallas_call(
        kernel,
        out_shape=jax.ShapeDtypeStruct((B * S, D), x.dtype),
        grid_spec=pl.GridSpec(grid=grid, in_specs=in_specs, out_specs=out_spec),
        compiler_params=pltpu.CompilerParams(
            dimension_semantics=("parallel",),
            vmem_limit_bytes=48 * 1024 * 1024),   # fits v5e/v6e/v7x scoped VMEM
    )(x2d, bias, prep["wqkv"], prep["bqkv"], prep["wo"], prep["bo"],
      prep["w1"], prep["b1"], prep["w2"], prep["b2"], prep["ln"])
    return out2d.reshape(B, S, D)


def reference_encoder_block(x, mask, p, n_heads):
    """Pure-JAX f32 reference mirroring the PyTorch forward (eval mode)."""
    B, S, D = x.shape
    d_k = D // n_heads

    def ln(t):
        mean = t.mean(-1, keepdims=True)
        std = jnp.sqrt(((t - mean) ** 2).sum(-1, keepdims=True) / (D - 1))
        return p["ln"][0] * (t - mean) / (std + EPS) + p["ln"][1]

    xn = ln(x)
    q = xn @ p["wq"] + p["bq"]
    k = xn @ p["wk"] + p["bk"]
    v = xn @ p["wv"] + p["bv"]
    q = q.reshape(B, S, n_heads, d_k).transpose(0, 2, 1, 3)
    k = k.reshape(B, S, n_heads, d_k).transpose(0, 2, 1, 3)
    v = v.reshape(B, S, n_heads, d_k).transpose(0, 2, 1, 3)
    scores = q @ jnp.swapaxes(k, -1, -2) / math.sqrt(d_k)
    scores = jnp.where(mask == 0, -1e9, scores)
    attn = jax.nn.softmax(scores, -1) @ v
    attn = attn.transpose(0, 2, 1, 3).reshape(B, S, D)
    x1 = x + attn @ p["wo"] + p["bo"]
    xn2 = ln(x1)
    ff = jnp.maximum(xn2 @ p["w1"] + p["b1"], 0.0) @ p["w2"] + p["b2"]
    return x1 + ff


if __name__ == "__main__":
    B, S, D, H, F = 2, 8, 32, 4, 64   # batch, seq, d_model, heads, d_ff

    key = jax.random.PRNGKey(0)
    ks = jax.random.split(key, 16)

    x = jax.random.normal(ks[0], (B, S, D), dtype=jnp.float32)
    # src_mask: (B, 1, S, S); zeros are masked positions (as in masked_fill_(mask==0)).
    src_mask = (jax.random.uniform(ks[1], (B, 1, S, S)) > 0.2).astype(jnp.float32)

    def lin(kw, kb, fan_in, fan_out):
        # deterministic "torch-like" uniform init, weight stored as (in, out)
        bound = 1.0 / math.sqrt(fan_in)
        w = jax.random.uniform(kw, (fan_in, fan_out), jnp.float32, -bound, bound)
        b = jax.random.uniform(kb, (1, fan_out), jnp.float32, -bound, bound)
        return w, b

    wq, bq = lin(ks[2], ks[3], D, D)
    wk, bk = lin(ks[4], ks[5], D, D)
    wv, bv = lin(ks[6], ks[7], D, D)
    wo, bo = lin(ks[8], ks[9], D, D)
    w1, b1 = lin(ks[10], ks[11], D, F)
    w2, b2 = lin(ks[12], ks[13], F, D)
    ln_params = jnp.array([1.0, 0.0], dtype=jnp.float32)   # [alpha, bias]

    params = dict(wq=wq, bq=bq, wk=wk, bk=bk, wv=wv, bv=bv, wo=wo, bo=bo,
                  w1=w1, b1=b1, w2=w2, b2=b2, ln=ln_params)

    ref = reference_encoder_block(x, src_mask, params, H)

    # --- f32 matmul path: exact-semantics check (tolerance covers the EUP
    #     approximate reciprocal used for the softmax normalization). ---
    prep_f32 = prepare_params(params, H, matmul_dtype=jnp.float32)
    out_f32 = jax.block_until_ready(encoder_block(x, src_mask, prep_f32, H))
    assert out_f32.shape == (B, S, D)
    assert jnp.allclose(out_f32, ref, atol=2e-3, rtol=2e-3), \
        "f32 kernel mismatch vs pure-JAX reference"

    # --- bf16 matmul path (production default on v6e/v7x MXU): loose check. ---
    prep_bf16 = prepare_params(params, H, matmul_dtype=jnp.bfloat16)
    out_bf16 = jax.block_until_ready(encoder_block(x, src_mask, prep_bf16, H))
    assert out_bf16.shape == (B, S, D)
    assert jnp.allclose(out_bf16, ref, atol=2e-1, rtol=2e-1), \
        "bf16 kernel mismatch vs pure-JAX reference"

    print("KERNEL_OK")
</pallas_src>

<mosaic_0001>
module attributes {stable_mosaic.version = 11 : i64} {
  func.func @encoder_block_kernel(%arg0: i32, %arg1: memref<8x32xf32, #tpu.memory_space<vmem>>, %arg2: memref<1x8x8xf32, #tpu.memory_space<vmem>>, %arg3: memref<32x96xf32, #tpu.memory_space<vmem>>, %arg4: memref<1x96xf32, #tpu.memory_space<vmem>>, %arg5: memref<32x32xf32, #tpu.memory_space<vmem>>, %arg6: memref<1x32xf32, #tpu.memory_space<vmem>>, %arg7: memref<32x64xf32, #tpu.memory_space<vmem>>, %arg8: memref<1x64xf32, #tpu.memory_space<vmem>>, %arg9: memref<64x32xf32, #tpu.memory_space<vmem>>, %arg10: memref<1x32xf32, #tpu.memory_space<vmem>>, %arg11: memref<2xf32, #tpu.memory_space<smem>>, %arg12: memref<8x32xf32, #tpu.memory_space<vmem>>) attributes {dimension_semantics = [#tpu.dimension_semantics<parallel>], iteration_bounds = array<i64: 2>, scalar_prefetch = 0 : i64, scratch_operands = 0 : i64, tpu.core_type = #tpu.core_type<tc>, window_params = [{transform_indices = @transform_0, window_bounds = array<i64: 8, 32>}, {transform_indices = @transform_1, window_bounds = array<i64: 1, 8, 8>}, {pipeline_mode = #tpu.pipeline_mode<synchronous>, transform_indices = @transform_2, window_bounds = array<i64: 32, 96>}, {pipeline_mode = #tpu.pipeline_mode<synchronous>, transform_indices = @transform_3, window_bounds = array<i64: 1, 96>}, {pipeline_mode = #tpu.pipeline_mode<synchronous>, transform_indices = @transform_4, window_bounds = array<i64: 32, 32>}, {pipeline_mode = #tpu.pipeline_mode<synchronous>, transform_indices = @transform_5, window_bounds = array<i64: 1, 32>}, {pipeline_mode = #tpu.pipeline_mode<synchronous>, transform_indices = @transform_6, window_bounds = array<i64: 32, 64>}, {pipeline_mode = #tpu.pipeline_mode<synchronous>, transform_indices = @transform_7, window_bounds = array<i64: 1, 64>}, {pipeline_mode = #tpu.pipeline_mode<synchronous>, transform_indices = @transform_8, window_bounds = array<i64: 64, 32>}, {pipeline_mode = #tpu.pipeline_mode<synchronous>, transform_indices = @transform_9, window_bounds = array<i64: 1, 32>}, {transform_indices = @transform_10, window_bounds = array<i64: 2>}, {transform_indices = @transform_11, window_bounds = array<i64: 8, 32>}]} {
    %c0 = arith.constant 0 : index
    %c0_0 = arith.constant 0 : index
    %0 = vector.load %arg1[%c0, %c0_0] : memref<8x32xf32, #tpu.memory_space<vmem>>, vector<8x32xf32>
    %c0_1 = arith.constant 0 : index
    %c0_2 = arith.constant 0 : index
    %c0_3 = arith.constant 0 : index
    %1 = vector.load %arg2[%c0_1, %c0_2, %c0_3] : memref<1x8x8xf32, #tpu.memory_space<vmem>>, vector<1x8x8xf32>
    %2 = vector.shape_cast %1 : vector<1x8x8xf32> to vector<8x8xf32>
    %c0_4 = arith.constant 0 : index
    %3 = memref.load %arg11[%c0_4] : memref<2xf32, #tpu.memory_space<smem>>
    %c1 = arith.constant 1 : index
    %4 = memref.load %arg11[%c1] : memref<2xf32, #tpu.memory_space<smem>>
    %cst = arith.constant dense<0.000000e+00> : vector<8xf32>
    %5 = vector.multi_reduction <add>, %0, %cst [1] : vector<8x32xf32> to vector<8xf32>
    %6 = vector.shape_cast %5 : vector<8xf32> to vector<8x1xf32>
    %cst_5 = arith.constant 3.200000e+01 : f32
    %7 = vector.broadcast %cst_5 : f32 to vector<8x1xf32>
    %8 = arith.divf %6, %7 : vector<8x1xf32>
    %9 = vector.broadcast %8 : vector<8x1xf32> to vector<8x32xf32>
    %10 = arith.subf %0, %9 : vector<8x32xf32>
    %11 = arith.mulf %10, %10 : vector<8x32xf32>
    %cst_6 = arith.constant dense<0.000000e+00> : vector<8xf32>
    %12 = vector.multi_reduction <add>, %11, %cst_6 [1] : vector<8x32xf32> to vector<8xf32>
    %13 = vector.shape_cast %12 : vector<8xf32> to vector<8x1xf32>
    %cst_7 = arith.constant 0.0322580636 : f32
    %14 = vector.broadcast %cst_7 : f32 to vector<8x1xf32>
    %15 = arith.mulf %13, %14 : vector<8x1xf32>
    %16 = math.sqrt %15 : vector<8x1xf32>
    %17 = vector.broadcast %8 : vector<8x1xf32> to vector<8x32xf32>
    %18 = arith.subf %0, %17 : vector<8x32xf32>
    %19 = vector.broadcast %3 : f32 to vector<8x32xf32>
    %20 = arith.mulf %19, %18 : vector<8x32xf32>
    %cst_8 = arith.constant 9.99999997E-7 : f32
    %21 = vector.broadcast %cst_8 : f32 to vector<8x1xf32>
    %22 = arith.addf %16, %21 : vector<8x1xf32>
    %23 = vector.broadcast %22 : vector<8x1xf32> to vector<8x32xf32>
    %24 = arith.divf %20, %23 : vector<8x32xf32>
    %25 = vector.broadcast %4 : f32 to vector<8x32xf32>
    %26 = arith.addf %24, %25 : vector<8x32xf32>
    %c0_9 = arith.constant 0 : index
    %c0_10 = arith.constant 0 : index
    %27 = vector.load %arg3[%c0_9, %c0_10] : memref<32x96xf32, #tpu.memory_space<vmem>>, vector<32x96xf32>
    %cst_11 = arith.constant dense<0.000000e+00> : vector<8x96xf32>
    %28 = tpu.matmul %26, %27, %cst_11 {dimension_numbers = #tpu.dot_dimension_numbers<[1], [0], [0], [1], [0, 0, 1, 1], [], []>} : vector<8x32xf32>, vector<32x96xf32>, vector<8x96xf32> -> vector<8x96xf32>
    %c0_12 = arith.constant 0 : index
    %c0_13 = arith.constant 0 : index
    %29 = vector.load %arg4[%c0_12, %c0_13] : memref<1x96xf32, #tpu.memory_space<vmem>>, vector<1x96xf32>
    %30 = vector.broadcast %29 : vector<1x96xf32> to vector<8x96xf32>
    %31 = arith.addf %28, %30 : vector<8x96xf32>
    %32 = vector.extract_strided_slice %31 {offsets = [0, 0], sizes = [8, 24], strides = [1, 1]} : vector<8x96xf32> to vector<8x24xf32>
    %33 = vector.extract_strided_slice %31 {offsets = [0, 24], sizes = [8, 24], strides = [1, 1]} : vector<8x96xf32> to vector<8x24xf32>
    %34 = vector.extract_strided_slice %31 {offsets = [0, 48], sizes = [8, 24], strides = [1, 1]} : vector<8x96xf32> to vector<8x24xf32>
    %35 = vector.extract_strided_slice %31 {offsets = [0, 72], sizes = [8, 24], strides = [1, 1]} : vector<8x96xf32> to vector<8x24xf32>
    %36 = vector.shape_cast %32 : vector<8x24xf32> to vector<1x8x24xf32>
    %37 = vector.shape_cast %33 : vector<8x24xf32> to vector<1x8x24xf32>
    %38 = vector.shape_cast %34 : vector<8x24xf32> to vector<1x8x24xf32>
    %39 = vector.shape_cast %35 : vector<8x24xf32> to vector<1x8x24xf32>
    %40 = tpu.concatenate %36, %37, %38, %39 in 0 : vector<1x8x24xf32>, vector<1x8x24xf32>, vector<1x8x24xf32>, vector<1x8x24xf32> -> vector<4x8x24xf32>
    %41 = vector.extract_strided_slice %40 {offsets = [0, 0, 0], sizes = [4, 8, 8], strides = [1, 1, 1]} : vector<4x8x24xf32> to vector<4x8x8xf32>
    %42 = vector.extract_strided_slice %40 {offsets = [0, 0, 8], sizes = [4, 8, 8], strides = [1, 1, 1]} : vector<4x8x24xf32> to vector<4x8x8xf32>
    %43 = vector.extract_strided_slice %40 {offsets = [0, 0, 16], sizes = [4, 8, 8], strides = [1, 1, 1]} : vector<4x8x24xf32> to vector<4x8x8xf32>
    "tpu.trace_start"() <{level = 10 : i32, message = "nqd,nkd->nqk"}> : () -> ()
    %cst_14 = arith.constant dense<0.000000e+00> : vector<4x8x8xf32>
    %44 = tpu.matmul %41, %42, %cst_14 {dimension_numbers = #tpu.dot_dimension_numbers<[2], [2], [1], [1], [0, 0, 0, 1, 1, 1], [0], [0]>} : vector<4x8x8xf32>, vector<4x8x8xf32>, vector<4x8x8xf32> -> vector<4x8x8xf32>
    "tpu.trace_stop"() : () -> ()
    %cst_15 = arith.constant 0.353553385 : f32
    %45 = vector.broadcast %cst_15 : f32 to vector<4x8x8xf32>
    %46 = arith.mulf %44, %45 : vector<4x8x8xf32>
    %47 = vector.shape_cast %2 : vector<8x8xf32> to vector<1x8x8xf32>
    %48 = vector.broadcast %47 : vector<1x8x8xf32> to vector<4x8x8xf32>
    %49 = arith.addf %46, %48 : vector<4x8x8xf32>
    %cst_16 = arith.constant dense<0xFF800000> : vector<4x8xf32>
    %50 = vector.multi_reduction <maximumf>, %49, %cst_16 [2] : vector<4x8x8xf32> to vector<4x8xf32>
    %51 = vector.shape_cast %50 : vector<4x8xf32> to vector<4x8x1xf32>
    %52 = vector.broadcast %51 : vector<4x8x1xf32> to vector<4x8x8xf32>
    %53 = arith.subf %49, %52 : vector<4x8x8xf32>
    %54 = math.exp %53 : vector<4x8x8xf32>
    %cst_17 = arith.constant dense<0.000000e+00> : vector<4x8xf32>
    %55 = vector.multi_reduction <add>, %54, %cst_17 [2] : vector<4x8x8xf32> to vector<4x8xf32>
    %56 = vector.shape_cast %55 : vector<4x8xf32> to vector<4x8x1xf32>
    %57 = tpu.reciprocal %56 {approx = true} : vector<4x8x1xf32> -> vector<4x8x1xf32>
    %58 = vector.broadcast %57 : vector<4x8x1xf32> to vector<4x8x8xf32>
    %59 = arith.mulf %54, %58 : vector<4x8x8xf32>
    "tpu.trace_start"() <{level = 10 : i32, message = "nqk,nkd->nqd"}> : () -> ()
    %cst_18 = arith.constant dense<0.000000e+00> : vector<4x8x8xf32>
    %60 = tpu.matmul %59, %43, %cst_18 {dimension_numbers = #tpu.dot_dimension_numbers<[2], [1], [1], [2], [0, 0, 0, 1, 1, 2], [0], [0]>} : vector<4x8x8xf32>, vector<4x8x8xf32>, vector<4x8x8xf32> -> vector<4x8x8xf32>
    "tpu.trace_stop"() : () -> ()
    %61 = vector.extract_strided_slice %60 {offsets = [0, 0, 0], sizes = [1, 8, 8], strides = [1, 1, 1]} : vector<4x8x8xf32> to vector<1x8x8xf32>
    %62 = vector.shape_cast %61 : vector<1x8x8xf32> to vector<8x8xf32>
    %63 = vector.extract_strided_slice %60 {offsets = [1, 0, 0], sizes = [1, 8, 8], strides = [1, 1, 1]} : vector<4x8x8xf32> to vector<1x8x8xf32>
    %64 = vector.shape_cast %63 : vector<1x8x8xf32> to vector<8x8xf32>
    %65 = vector.extract_strided_slice %60 {offsets = [2, 0, 0], sizes = [1, 8, 8], strides = [1, 1, 1]} : vector<4x8x8xf32> to vector<1x8x8xf32>
    %66 = vector.shape_cast %65 : vector<1x8x8xf32> to vector<8x8xf32>
    %67 = vector.extract_strided_slice %60 {offsets = [3, 0, 0], sizes = [1, 8, 8], strides = [1, 1, 1]} : vector<4x8x8xf32> to vector<1x8x8xf32>
    %68 = vector.shape_cast %67 : vector<1x8x8xf32> to vector<8x8xf32>
    %69 = tpu.concatenate %62, %64, %66, %68 in 1 : vector<8x8xf32>, vector<8x8xf32>, vector<8x8xf32>, vector<8x8xf32> -> vector<8x32xf32>
    %c0_19 = arith.constant 0 : index
    %c0_20 = arith.constant 0 : index
    %70 = vector.load %arg5[%c0_19, %c0_20] : memref<32x32xf32, #tpu.memory_space<vmem>>, vector<32x32xf32>
    %cst_21 = arith.constant dense<0.000000e+00> : vector<8x32xf32>
    %71 = tpu.matmul %69, %70, %cst_21 {dimension_numbers = #tpu.dot_dimension_numbers<[1], [0], [0], [1], [0, 0, 1, 1], [], []>} : vector<8x32xf32>, vector<32x32xf32>, vector<8x32xf32> -> vector<8x32xf32>
    %c0_22 = arith.constant 0 : index
    %c0_23 = arith.constant 0 : index
    %72 = vector.load %arg6[%c0_22, %c0_23] : memref<1x32xf32, #tpu.memory_space<vmem>>, vector<1x32xf32>
    %73 = vector.broadcast %72 : vector<1x32xf32> to vector<8x32xf32>
    %74 = arith.addf %71, %73 : vector<8x32xf32>
    %75 = arith.addf %0, %74 : vector<8x32xf32>
    %cst_24 = arith.constant dense<0.000000e+00> : vector<8xf32>
    %76 = vector.multi_reduction <add>, %75, %cst_24 [1] : vector<8x32xf32> to vector<8xf32>
    %77 = vector.shape_cast %76 : vector<8xf32> to vector<8x1xf32>
    %cst_25 = arith.constant 3.200000e+01 : f32
    %78 = vector.broadcast %cst_25 : f32 to vector<8x1xf32>
    %79 = arith.divf %77, %78 : vector<8x1xf32>
    %80 = vector.broadcast %79 : vector<8x1xf32> to vector<8x32xf32>
    %81 = arith.subf %75, %80 : vector<8x32xf32>
    %82 = arith.mulf %81, %81 : vector<8x32xf32>
    %cst_26 = arith.constant dense<0.000000e+00> : vector<8xf32>
    %83 = vector.multi_reduction <add>, %82, %cst_26 [1] : vector<8x32xf32> to vector<8xf32>
    %84 = vector.shape_cast %83 : vector<8xf32> to vector<8x1xf32>
    %cst_27 = arith.constant 0.0322580636 : f32
    %85 = vector.broadcast %cst_27 : f32 to vector<8x1xf32>
    %86 = arith.mulf %84, %85 : vector<8x1xf32>
    %87 = math.sqrt %86 : vector<8x1xf32>
    %88 = vector.broadcast %79 : vector<8x1xf32> to vector<8x32xf32>
    %89 = arith.subf %75, %88 : vector<8x32xf32>
    %90 = vector.broadcast %3 : f32 to vector<8x32xf32>
    %91 = arith.mulf %90, %89 : vector<8x32xf32>
    %cst_28 = arith.constant 9.99999997E-7 : f32
    %92 = vector.broadcast %cst_28 : f32 to vector<8x1xf32>
    %93 = arith.addf %87, %92 : vector<8x1xf32>
    %94 = vector.broadcast %93 : vector<8x1xf32> to vector<8x32xf32>
    %95 = arith.divf %91, %94 : vector<8x32xf32>
    %96 = vector.broadcast %4 : f32 to vector<8x32xf32>
    %97 = arith.addf %95, %96 : vector<8x32xf32>
    %c0_29 = arith.constant 0 : index
    %c0_30 = arith.constant 0 : index
    %98 = vector.load %arg7[%c0_29, %c0_30] : memref<32x64xf32, #tpu.memory_space<vmem>>, vector<32x64xf32>
    %cst_31 = arith.constant dense<0.000000e+00> : vector<8x64xf32>
    %99 = tpu.matmul %97, %98, %cst_31 {dimension_numbers = #tpu.dot_dimension_numbers<[1], [0], [0], [1], [0, 0, 1, 1], [], []>} : vector<8x32xf32>, vector<32x64xf32>, vector<8x64xf32> -> vector<8x64xf32>
    %c0_32 = arith.constant 0 : index
    %c0_33 = arith.constant 0 : index
    %100 = vector.load %arg8[%c0_32, %c0_33] : memref<1x64xf32, #tpu.memory_space<vmem>>, vector<1x64xf32>
    %101 = vector.broadcast %100 : vector<1x64xf32> to vector<8x64xf32>
    %102 = arith.addf %99, %101 : vector<8x64xf32>
    %cst_34 = arith.constant 0.000000e+00 : f32
    %103 = vector.broadcast %cst_34 : f32 to vector<8x64xf32>
    %104 = arith.maximumf %102, %103 : vector<8x64xf32>
    %c0_35 = arith.constant 0 : index
    %c0_36 = arith.constant 0 : index
    %105 = vector.load %arg9[%c0_35, %c0_36] : memref<64x32xf32, #tpu.memory_space<vmem>>, vector<64x32xf32>
    %cst_37 = arith.constant dense<0.000000e+00> : vector<8x32xf32>
    %106 = tpu.matmul %104, %105, %cst_37 {dimension_numbers = #tpu.dot_dimension_numbers<[1], [0], [0], [1], [0, 0, 1, 1], [], []>} : vector<8x64xf32>, vector<64x32xf32>, vector<8x32xf32> -> vector<8x32xf32>
    %c0_38 = arith.constant 0 : index
    %c0_39 = arith.constant 0 : index
    %107 = vector.load %arg10[%c0_38, %c0_39] : memref<1x32xf32, #tpu.memory_space<vmem>>, vector<1x32xf32>
    %108 = vector.broadcast %107 : vector<1x32xf32> to vector<8x32xf32>
    %109 = arith.addf %106, %108 : vector<8x32xf32>
    %110 = arith.addf %75, %109 : vector<8x32xf32>
    %c0_40 = arith.constant 0 : index
    %c0_41 = arith.constant 0 : index
    %111 = vector.load %arg12[%c0_40, %c0_41] : memref<8x32xf32, #tpu.memory_space<vmem>>, vector<8x32xf32>
    tpu.vector_store %arg12[%c0_40, %c0_41], %110 {strides = array<i32>} : memref<8x32xf32, #tpu.memory_space<vmem>>, vector<8x32xf32>,
    return
  }
  func.func @transform_0(%arg0: i32) -> (i32, i32) {
    %c0_i32 = arith.constant 0 : i32
    %c0_i32_0 = arith.constant 0 : i32
    return %arg0, %c0_i32 : i32, i32
  }
  func.func @transform_1(%arg0: i32) -> (i32, i32, i32) {
    %c0_i32 = arith.constant 0 : i32
    %c0_i32_0 = arith.constant 0 : i32
    %c0_i32_1 = arith.constant 0 : i32
    return %arg0, %c0_i32, %c0_i32_0 : i32, i32, i32
  }
  func.func @transform_2(%arg0: i32) -> (i32, i32) {
    %c0_i32 = arith.constant 0 : i32
    %c0_i32_0 = arith.constant 0 : i32
    %c0_i32_1 = arith.constant 0 : i32
    return %c0_i32, %c0_i32_0 : i32, i32
  }
  func.func @transform_3(%arg0: i32) -> (i32, i32) {
    %c0_i32 = arith.constant 0 : i32
    %c0_i32_0 = arith.constant 0 : i32
    %c0_i32_1 = arith.constant 0 : i32
    return %c0_i32, %c0_i32_0 : i32, i32
  }
  func.func @transform_4(%arg0: i32) -> (i32, i32) {
    %c0_i32 = arith.constant 0 : i32
    %c0_i32_0 = arith.constant 0 : i32
    %c0_i32_1 = arith.constant 0 : i32
    return %c0_i32, %c0_i32_0 : i32, i32
  }
  func.func @transform_5(%arg0: i32) -> (i32, i32) {
    %c0_i32 = arith.constant 0 : i32
    %c0_i32_0 = arith.constant 0 : i32
    %c0_i32_1 = arith.constant 0 : i32
    return %c0_i32, %c0_i32_0 : i32, i32
  }
  func.func @transform_6(%arg0: i32) -> (i32, i32) {
    %c0_i32 = arith.constant 0 : i32
    %c0_i32_0 = arith.constant 0 : i32
    %c0_i32_1 = arith.constant 0 : i32
    return %c0_i32, %c0_i32_0 : i32, i32
  }
  func.func @transform_7(%arg0: i32) -> (i32, i32) {
    %c0_i32 = arith.constant 0 : i32
    %c0_i32_0 = arith.constant 0 : i32
    %c0_i32_1 = arith.constant 0 : i32
    return %c0_i32, %c0_i32_0 : i32, i32
  }
  func.func @transform_8(%arg0: i32) -> (i32, i32) {
    %c0_i32 = arith.constant 0 : i32
    %c0_i32_0 = arith.constant 0 : i32
    %c0_i32_1 = arith.constant 0 : i32
    return %c0_i32, %c0_i32_0 : i32, i32
  }
  func.func @transform_9(%arg0: i32) -> (i32, i32) {
    %c0_i32 = arith.constant 0 : i32
    %c0_i32_0 = arith.constant 0 : i32
    %c0_i32_1 = arith.constant 0 : i32
    return %c0_i32, %c0_i32_0 : i32, i32
  }
  func.func @transform_10(%arg0: i32) -> i32 {
    %c0_i32 = arith.constant 0 : i32
    %c0_i32_0 = arith.constant 0 : i32
    return %c0_i32 : i32
  }
  func.func @transform_11(%arg0: i32) -> (i32, i32) {
    %c0_i32 = arith.constant 0 : i32
    %c0_i32_0 = arith.constant 0 : i32
    return %arg0, %c0_i32 : i32, i32
  }
}

</mosaic_0001>

<bundles_post_ra>
// kernel: tpu_custom_call.1
= control target key start
LH: loop header
LB: loop body
LE: loop exit
PB: predicated region body
PF: predicated region fallthrough
CT: control target
= control target key end

     0   :  { %s1768_s0 = inlined_call_operand.hbm [shape: f32[16,32], index: 0, kind: input, shape index: {}]   ;;  %s1769_s1 = inlined_call_operand.hbm [shape: f32[2,8,8], index: 1, kind: input, shape index: {}]   ;;  %s1770_s2 = inlined_call_operand.vmem [shape: f32[32,96], index: 2, kind: input, shape index: {}]   ;;  %s1771_s3 = inlined_call_operand.vmem [shape: f32[1,96], index: 3, kind: input, shape index: {}]   ;;  %s1772_s4 = inlined_call_operand.vmem [shape: f32[32,32], index: 4, kind: input, shape index: {}]   ;;  %s1773_s5 = inlined_call_operand.vmem [shape: f32[1,32], index: 5, kind: input, shape index: {}]   ;;  %s1774_s6 = inlined_call_operand.vmem [shape: f32[32,64], index: 6, kind: input, shape index: {}]   ;;  %s1775_s7 = inlined_call_operand.vmem [shape: f32[1,64], index: 7, kind: input, shape index: {}]   ;;  %s1776_s8 = inlined_call_operand.vmem [shape: f32[64,32], index: 8, kind: input, shape index: {}]   ;;  %s1777_s9 = inlined_call_operand.vmem [shape: f32[1,32], index: 9, kind: input, shape index: {}]   ;;  %s1778_s10 = inlined_call_operand.vmem [shape: f32[2], index: 10, kind: input, shape index: {}]   ;;  %s1779_s11 = inlined_call_operand.hbm [shape: f32[16,32], index: 11, kind: output, shape index: {}]  }
   0x1   :  { %1789 = sst [smem:[#allocation21_spill]] %s1778_s10 }
   0x2   :  { %1790 = sst [smem:[#allocation22_spill]] %s1779_s11 }
   0x3   :  { %16 = vsyncpa [#allocation3], 0 }
   0x4   :  { %18 = vsyncpa [#allocation3 + $0x1], 0 }
   0x5   :  { %19 = vsyncpa [#allocation7], 0 }
   0x6   :  { %21 = vsyncpa [#allocation7 + $0x1], 0 }
   0x7   :  { %22 = vsyncpa [#allocation5], 0 }
   0x8   :  { %23 = vsyncpa [#allocation4], 0 }
   0x9   :  { %25 = vsyncpa [#allocation4 + $0x1], 0  ;;  %s1451_s17 = smov 0   ;;  %s1453_s18 = smov 0  }
   0xa   :  { %s1455_s19 = smov 0   ;;  %s1457_s20 = smov 0  }
   0xb LB: > { %1791 = sst [smem:[#allocation14_spill]] %s1367_s17  ;;  %s1472_s21 = sadd.s32 4294967295, %s1379_s20   ;;  %s1379_s20 = sphi %s1457_s20, %s1810_s20   ;;  %s1375_s19 = sphi %s1455_s19, %s1812_s19   ;;  %s1371_s18 = sphi %s1453_s18, %s1814_s18   ;;  %s1367_s17 = sphi %s1451_s17, %s1813_s17  }
   0xc   : > { %1792 = sst [smem:[#allocation15_spill]] %s1375_s19  ;;  %s1090_s22 = sadd.s32 4294967294, %s1379_s20  }
   0xd   : > { %1793 = sst [smem:[#allocation16_spill]] %s1379_s20  ;;  %p51_p0 = scmp.ne.s32.totalorder %s1371_s18, %s1367_s17 }
   0xe   : > { %p52_p1 = scmp.eq.s32.totalorder %s1472_s21, 0  ;;  %p290_p2 = scmp.eq.s32.totalorder %s1472_s21, 1 }
   0xf   : > { %p296_p3 = scmp.eq.s32.totalorder %s1090_s22, 1  ;;  %p1091_p5 = scmp.ge.s32.totalorder %s1379_s20, 1 }
  0x10   : > { %p1481_p4 = por %p52_p1, %p51_p0  ;;  %p303_p7 = scmp.lt.s32.totalorder %s1379_s20, 3 }
  0x11   : > { %p1486_p6 = por %p296_p3, %p51_p0  ;;  %s1797_s10 = sld [smem:[#allocation21_spill]] }
  0x12   : > { %p1494_p8 = pnand %p1091_p5, %p303_p7  ;;  %s1502_s29 = sadd.s32 1, %s1379_s20  }
  0x13   : > { %s1795_s24 = scalar_select %p1486_p6, 1, 0 }
  0x14   : > { %p1134_p10 = pneg %p1494_p8  ;;  %1799 = sst [smem:[#allocation18_spill]] %s1502_s29 }
  0x15   : > { %1796 = sst [smem:[#allocation17_spill]] %s1795_s24  ;;  %s35_s30 = ssub.s32 %s1379_s20, %s1502_s29 }
  0x16   : > { %p1135_p11 = pnand %p1134_p10, %p52_p1  ;;  %p36_p12 = scmp.eq.s32.totalorder %s35_s30, 0 }
  0x17   : > { %s339_s27 = sshll.u32 %s1797_s10, 4  ;;  %s38_s12 = sadd.s32 1, %s1375_s19  ;;  %s340_s27 = int_to_ptr.vmem [resolvable:$true] %s339_s27 }
  0x18   : > { %p45_p13 = scmp.ne.s32.totalorder %s1375_s19, %s1371_s18  ;;  %s1381_s13 = smov [#allocation8]  }
  0x19   : > { %1137 = dma.vmem_to_smem (!%p1135_p11), %s340_s27, 16, %s1381_s13, [#allocation5]  }
  0x1a   : > { %s1512_s14 = scalar_select %p36_p12, %s1375_s19, %s38_s12  }
  0x1b   : > { %p46_p0 = scmp.eq.s32.totalorder %s1379_s20, 0  ;;  %p1517_p3 = por %p290_p2, %p45_p13 }
  0x1c   : > { %1800 = sst [smem:[#allocation19_spill]] %s1512_s14  ;;  %p1150_p5 = scmp.lt.s32.totalorder %s1379_s20, 2 }
  0x1d   : > { %s1801_s15 = scalar_select %p1517_p3, 1, 0 }
  0x1e   : > { %s1523_s16 = sand.u32 1, %s1375_s19   ;;  %p47_p7 = por %p46_p0, %p45_p13 }
  0x1f   : > { %1802 = sst [smem:[#allocation20_spill]] %s1801_s15  ;;  %s1094_s22 = sshll.u32 %s1523_s16, 3 }
  0x20   : > { %s1095_s25 = sshll.u32 %s1379_s20, 3  ;;  %s354_s13 = scalar_lea.vmem [#allocation2], %s1094_s22 }
  0x21   : > { %s358_s27 = scalar_lea.hbm %s1768_s0, %s1095_s25  ;;  %s362_s10 = sshll.u32 %s354_s13, 4  ;;  %s363_s10 = int_to_ptr.vmem [resolvable:$true] %s362_s10 }
  0x22   : > { %s360_s12 = sshll.u32 %s358_s27, 4  ;;  %p1530_p2 = pnand %p1150_p5, %p47_p7  ;;  %s361_s12 = int_to_ptr.hbm [resolvable:$true] %s360_s12 }
  0x23   : > { %s377_s24 = scalar_lea.hbm %s1769_s1, %s1095_s25  ;;  %s351_s17 = scalar_lea.sflag [#allocation3], %s1523_s16 }
  0x24   : > { %s379_s20 = sshll.u32 %s377_s24, 4  ;;  %s1245_s15 = sshra.s32 %s361_s12, 4  ;;  %s1246_s15 = int_to_ptr.hbm [resolvable:$true] %s1245_s15  ;;  %s380_s20 = int_to_ptr.hbm [resolvable:$true] %s379_s20 }
  0x25   : > { %s1247_s26 = scalar_lea.hbm %s1246_s15, 8  ;;  %p1249_p11 = pneg %p1530_p2 }
  0x26   : > { %p1248_p10 = scmp.ne.s32.totalorder %s1246_s15, %s1247_s26  ;;  %s1252_s13 = scalar_lea.hbm %s1768_s0, 16 }
  0x27   : > { %p1253_p0 = scmp.lt.s32.totalorder %s1246_s15, %s1768_s0  ;;  %p1254_p5 = scmp.lt.s32.totalorder %s1252_s13, %s1247_s26 }
  0x28   : > { %p1250_p12 = pnand %p1249_p11, %p1248_p10 }
  0x29   : > { %p1255_p7 = por %p1254_p5, %p1253_p0 }
  0x2a   : > { %p1251_p13 = pneg %p1250_p12 }
  0x2c   : > { %p1256_p9 = pnand %p1255_p7, %p1251_p13 }
  0x2e   : > { %1259 = shalt.err (!%p1256_p9)
}
  0x2f   : > { %1141 = dma.hbm_to_vmem [thread:$0]  (!%p1530_p2), %s361_s12, 128, %s363_s10, %s351_s17  }
  0x30   : > { %s373_s24 = scalar_lea.vmem [#allocation6], %s1094_s22  ;;  %s370_s11 = scalar_lea.sflag [#allocation7], %s1523_s16 }
  0x31   : > { %s381_s25 = sshll.u32 %s373_s24, 4  ;;  %s1275_s30 = sshra.s32 %s380_s20, 4  ;;  %s382_s25 = int_to_ptr.vmem [resolvable:$true] %s381_s25  ;;  %s1276_s30 = int_to_ptr.hbm [resolvable:$true] %s1275_s30 }
  0x32   : > { %s1277_s27 = scalar_lea.hbm %s1276_s30, 8  ;;  %s1282_s13 = scalar_lea.hbm %s1769_s1, 16 }
  0x33   : > { %p1278_p10 = scmp.ne.s32.totalorder %s1276_s30, %s1277_s27  ;;  %p1283_p9 = scmp.lt.s32.totalorder %s1276_s30, %s1769_s1 }
  0x34   : > { %p1284_p13 = scmp.lt.s32.totalorder %s1282_s13, %s1277_s27 }
  0x35   : > { %p1280_p12 = pnand %p1278_p10, %p1249_p11 }
  0x36   : > { %p1285_p5 = por %p1284_p13, %p1283_p9 }
  0x37   : > { %p1281_p0 = pneg %p1280_p12 }
  0x39   : > { %p1286_p7 = pnand %p1285_p5, %p1281_p0 }
  0x3b   : > { %1289 = shalt.err (!%p1286_p7)
}
  0x3c   : > { %1144 = dma.hbm_to_vmem [thread:$0]  (!%p1530_p2), %s380_s20, 128, %s382_s25, %s370_s11  }
  0x3d   : > { %390 = sbr.rel (%p1494_p8) target bundleno = 2060 (0x80c), region = 64  ;;  %s1566_s10 = sand.u32 (!%p1494_p8), 1, %s1371_s18  }
  0x3e   : > { %s1569_s17 = sshll.u32 (!%p1494_p8), %s1566_s10, 3  ;;  %s393_s16 = scalar_lea.sflag (!%p1494_p8), [#allocation3], %s1566_s10 }
  0x3f   : > { %s396_s22 = scalar_lea.vmem (!%p1494_p8), [#allocation2], %s1569_s17 }
  0x42   : > { %1350 = dma.done.wait (%p1481_p4), %s393_s16, 128  }
  0x43   : > { %1352 = vsyncadd (%p1481_p4), %s393_s16, 4294967168  ;;  %s403_s11 = scalar_lea.sflag [#allocation7], %s1566_s10  ;;  %s406_s20 = scalar_lea.vmem [#allocation6], %s1569_s17 }
  0x44   : > { %1354 = dma.done.wait (%p1481_p4), %s403_s11, 128  }
  0x45   : > { %1356 = vsyncadd (%p1481_p4), %s403_s11, 4294967168 }
  0x46   : > { %1358 = dma.done.wait (%p52_p1), [#allocation5], 16  }
  0x47   : > { %1360 = vsyncadd (%p52_p1), [#allocation5], 4294967280 }
  0x48   : > { %417 = sfence }
  0x49   : > { %v1587_v0 = vld [vmem:[%s396_s22] sm:$0xff]  ;;  %vm461_vm0 = vcmask 261120   ;;  %v1382_v2 = vmov 32.0   ;;  %v514_v14 = vld [vmem:[%s1770_s2 + $0x18] sm:$0xff]  ;;  %v513_v15 = vld [vmem:[%s1770_s2 + $0x10] sm:$0xff]  ;;  %s1608_s15 = sld [smem:[#allocation8]] }
  0x4a   : > { %v462_v1 = vsel %vm461_vm0, %v1587_v0, 0.0  ;;  %1204 = vrcp.f32 %v1382_v2  ;;  %534 = vmatpush.msra.mxu0 %v514_v14  ;;  %v512_v16 = vld [vmem:[%s1770_s2 + $0x8] sm:$0xff]  ;;  %v511_v17 = vld [vmem:[%s1770_s2] sm:$0xff]  ;;  %s1610_s26 = sld [smem:[#allocation8 + $0x1]]  ;;  %s1383_s29 = smov 56   ;;  %vm551_vm8 = vcmask 64512  }
  0x4b   : > { %463 = vadd.xlane.f32.xlu0 %v462_v1  ;;  %v1200_v46 = vld [vmem:[%s1771_s3] ss:$0 sm:$0xff]  ;;  %s1384_s16 = smov 104   ;;  %s1385_s22 = smov 80   ;;  %v458_v60 = vld [vmem:[%s406_s20] sm:$0xff]  ;;  %vm823_vm9 = vcmask 130048  }
  0x4c   : > { %535 = vmatpush.msra.mxu0 %v513_v15  ;;  %s1386_s11 = smov 120   ;;  %s1387_s23 = smov 112   ;;  %vm825_vm10 = vcmask 195584  }
  0x4d   : > { %s1388_s20 = smov 8   ;;  %s1389_s28 = smov 16  }
  0x4e   : > { %536 = vmatpush.msra.mxu0 %v512_v16  ;;  %s1390_s14 = smov 24   ;;  %s1121_s27 = sshll.u32 %s1472_s21, 3 }
  0x4f   : > { %v491_v37 = vstv %s1608_s15  ;;  %s970_s21 = scalar_lea.sflag [#allocation4], %s1566_s10 }
  0x50   : > { %v1205_v3 = vpop.eup %1204  ;;  %537 = vmatpush.msra.mxu0 %v511_v17  ;;  %v509_v43 = vstv %s1610_s26 }
  0x51   : > { %v466_v4 = vmul.f32 32.0, %v1205_v3  ;;  %vm470_vm1 = vweird.f32 %v1205_v3 }
  0x53   : > { %v467_v5 = vsub.f32 1.0, %v466_v4 }
  0x55   : > { %v468_v6 = vmul.f32 %v1205_v3, %v467_v5 }
  0x57   : > { %v469_v7 = vadd.f32 %v1205_v3, %v468_v6 }
  0x59   : > { %v1591_v8 = vsel %vm470_vm1, %v1205_v3, %v469_v7 }
  0xbe   : > { %v464_v9 = vpop.xlane.xlu0 %463 }
  0xbf   : > { %v472_v10 = vmul.f32 %v1591_v8, %v464_v9 }
  0xc1   : > { %v473_v11 = vsub.f32 %v1587_v0, %v472_v10 }
  0xc3   : > { %v474_v12 = vmul.f32 %v473_v11, %v473_v11  ;;  %v492_v40 = vmul.f32 %v491_v37, %v473_v11 }
  0xc5   : > { %v475_v13 = vsel %vm461_vm0, %v474_v12, 0.0 }
  0xc6   : > { %476 = vadd.xlane.f32.xlu0 %v475_v13 }
 0x139   : > { %v477_v18 = vpop.xlane.xlu0 %476 }
 0x13a   : > { %v478_v19 = vmul.f32 0.032258064, %v477_v18 }
 0x13c   : > { %1206 = vrsqrt.f32 %v478_v19  ;;  %vm486_vm2 = vcmp.eq.f32.partialorder %v478_v19, inf  ;;  %v489_v27 = vand.u32 2147483648, %v478_v19  ;;  %vm488_vm3 = vcmp.eq.f32.partialorder %v478_v19, 0.0 }
 0x142   : > { %v1207_v20 = vpop.eup %1206 }
 0x143   : > { %v480_v21 = vmul.f32 %v1207_v20, %v478_v19 }
 0x145   : > { %v481_v22 = vmul.f32 %v1207_v20, %v480_v21 }
 0x147   : > { %v482_v23 = vmul.f32 0.5, %v481_v22 }
 0x149   : > { %v483_v24 = vsub.f32 1.5, %v482_v23 }
 0x14b   : > { %v484_v25 = vmul.f32 %v1207_v20, %v483_v24 }
 0x14d   : > { %v485_v26 = vmul.f32 %v484_v25, %v478_v19 }
 0x14f   : > { %v487_v28 = vsel %vm486_vm2, %v478_v19, %v485_v26  ;;  %vm943_vm2 = vcmask 523264  }
 0x150   : > { %v490_v29 = vsel %vm488_vm3, %v489_v27, %v487_v28 }
 0x151   : > { %v493_v30 = vadd.f32 1e-06, %v490_v29 }
 0x153   : > { %1208 = vrcp.f32 %v493_v30  ;;  %v505_v34 = vand.u32 2147483648, %v493_v30  ;;  %v503_v36 = vand.u32 2147483647, %v493_v30  ;;  %vm499_vm5 = vweird.f32 %v493_v30 }
 0x155   : > { %v506_v39 = vor.u32 1.1754944e-38, %v505_v34  ;;  %vm504_vm7 = vcmp.eq.f32.partialorder %v503_v36, 8.507059e+37 }
 0x159   : > { %v1209_v31 = vpop.eup %1208 }
 0x15a   : > { %v495_v32 = vmul.f32 %v1209_v31, %v493_v30  ;;  %vm500_vm4 = vweird.f32 %v1209_v31 }
 0x15b   : > { %vm501_vm6 = vmor %vm499_vm5, %vm500_vm4 }
 0x15c   : > { %v496_v33 = vsub.f32 1.0, %v495_v32 }
 0x15e   : > { %v497_v35 = vmul.f32 %v1209_v31, %v496_v33 }
 0x160   : > { %v498_v38 = vadd.f32 %v1209_v31, %v497_v35 }
 0x162   : > { %v502_v41 = vsel %vm501_vm6, %v1209_v31, %v498_v38 }
 0x163   : > { %v507_v42 = vsel %vm504_vm7, %v506_v39, %v502_v41 }
 0x164   : > { %v508_v44 = vmul.f32 %v507_v42, %v492_v40 }
 0x166   : > { %v510_v45 = vadd.f32 %v509_v43, %v508_v44 }
 0x168   : > { %1104 = vmatmul.msk.f32.vlgmr.msra.gmra.mxu0 %vm461_vm0, %v510_v45 }
 0x1e5   : > { %v539_v47 = vpop.f32.mrf.mxu0 }
 0x1e6   : > { %v1622_v48 = vadd.f32 %v1200_v46, %v539_v47 }
 0x1e8   : > { %547 = vrot.lane.b32.xlu2 %v1622_v48, %s1383_s29  ;;  %543 = vrot.lane.b32.xlu1 %v1622_v48, %s1384_s16 }
 0x1f0   : > { %545 = vrot.lane.b32.xlu1 %v1622_v48, %s1385_s22  ;;  %s1804_s22 = sld [smem:[#allocation22_spill]] }
 0x1f8   : > { %549 = vrot.lane.b32.xlu1 %v1622_v48, %s1386_s11 }
 0x242   : > { %v1628_v50 = vpop.permute.xlu2 %547 }
 0x25a   : > { %v544_v49 = vpop.permute.xlu1 %543 }
 0x25b   : > { %576 = vrot.lane.b32.xlu2 %v544_v49, %s1386_s11 }
 0x262   : > { %v546_v51 = vpop.permute.xlu1 %545 }
 0x263   : > { %628 = vrot.lane.b32.xlu2 %v1628_v50, %s1386_s11  ;;  %602 = vrot.lane.b32.xlu0 %v546_v51, %s1386_s11  ;;  %v1195_v3 = vpack.i.bf16 %v546_v51, %v544_v49 }
 0x26a   : > { %v550_v52 = vpop.permute.xlu1 %549 }
 0x26b   : > { %1105 = vmatpush.xpose.msk.msra.mxu1 %vm551_vm8, %v550_v52 }
 0x26e   : > { %1106 = vmatmul.msk.f32.vlgmr.msra.gmra.mxu1 %vm551_vm8, %v1622_v48 }
 0x2b5   : > { %v577_v53 = vpop.permute.xlu2 %576 }
 0x2b6   : > { %1107 = vmatpush.xpose.msk.msra.mxu2 %vm551_vm8, %v577_v53 }
 0x2b9   : > { %1108 = vmatmul.msk.f32.vlgmr.msra.gmra.mxu2 %vm551_vm8, %v544_v49 }
 0x2bd   : > { %v629_v54 = vpop.permute.xlu2 %628 }
 0x2be   : > { %1111 = vmatpush.xpose.msk.msrb.mxu1 %vm551_vm8, %v629_v54  ;;  %v830_v54 = vld [vmem:[%s1772_s4 + $0x18] sm:$0xff] }
 0x2c1   : > { %1112 = vmatmul.msk.f32.vlgmr.msrb.gmra.mxu1 %vm551_vm8, %v1628_v50 }
 0x2d5   : > { %v603_v55 = vpop.permute.xlu0 %602 }
 0x2d6   : > { %1109 = vmatpush.xpose.msk.msra.mxu3 %vm551_vm8, %v603_v55  ;;  %v829_v55 = vld [vmem:[%s1772_s4 + $0x10] sm:$0xff] }
 0x2d9   : > { %1110 = vmatmul.msk.f32.vlgmr.msra.gmra.mxu3 %vm551_vm8, %v546_v51 }
 0x2eb   : > { %v573_v56 = vpop.f32.mrf.mxu1 }
 0x2ec   : > { %v654_v7 = vmul.f32 0.35355338, %v573_v56  ;;  %v828_v56 = vld [vmem:[%s1772_s4 + $0x8] sm:$0xff] }
 0x2ee   : > { %v658_v10 = vadd.f32 %v654_v7, %v458_v60 }
 0x2f0   : > { %v662_v11 = vsel %vm551_vm8, %v658_v10, -inf }
 0x33c   : > { %v599_v57 = vpop.f32.mrf.mxu2 }
 0x33d   : > { %v655_v58 = vmul.f32 0.35355338, %v599_v57  ;;  %v827_v57 = vld [vmem:[%s1772_s4] sm:$0xff] }
 0x33e   : > { %v651_v59 = vpop.f32.mrf.mxu1 }
 0x33f   : > { %v657_v61 = vmul.f32 0.35355338, %v651_v59  ;;  %v659_v62 = vadd.f32 %v655_v58, %v458_v60 }
 0x341   : > { %v665_v63 = vsel %vm551_vm8, %v659_v62, -inf  ;;  %v661_v1 = vadd.f32 %v657_v61, %v458_v60 }
 0x342   : > { %666 = vmax.xlane.f32.xlu1 %v665_v63 }
 0x343   : > { %v671_v2 = vsel %vm551_vm8, %v661_v1, -inf }
 0x344   : > { %672 = vmax.xlane.f32.xlu0 %v671_v2  ;;  %v1201_v2 = vld [vmem:[%s1773_s5] ss:$0 sm:$0xff] }
 0x358   : > { %1196 = vrot.lane.b32.xlu0 %v1195_v3, %s1387_s23 }
 0x35c   : > { %v625_v4 = vpop.f32.mrf.mxu3 }
 0x35d   : > { %v656_v5 = vmul.f32 0.35355338, %v625_v4 }
 0x35f   : > { %v660_v6 = vadd.f32 %v656_v5, %v458_v60 }
 0x361   : > { %v668_v9 = vsel %vm551_vm8, %v660_v6, -inf }
 0x362   : > { %669 = vmax.xlane.f32.xlu2 %v668_v9 }
 0x36a   : > { %663 = vmax.xlane.f32.xlu2 %v662_v11 }
 0x3b5   : > { %v667_v12 = vpop.xlane.xlu1 %666 }
 0x3b6   : > { %v675_v15 = vsub.f32 %v659_v62, %v667_v12 }
 0x3b7   : > { %v673_v13 = vpop.xlane.xlu0 %672 }
 0x3b8   : > { %v677_v14 = vsub.f32 %v661_v1, %v673_v13  ;;  %v680_v17 = vmul.f32 1.442695, %v675_v15  ;;  %v902_v13 = vld [vmem:[%s1774_s6 + $0x18] sm:$0xff] }
 0x3ba   : > { %v684_v16 = vmul.f32 1.442695, %v677_v14  ;;  %v900_v14 = vld [vmem:[%s1774_s6 + $0x8] sm:$0xff] }
 0x3bc   : > { %1210 = vpow2.f32 %v684_v16 }
 0x3bd   : > { %1212 = vpow2.f32 %v680_v17 }
 0x3c2   : > { %v1211_v18 = vpop.eup %1210 }
 0x3c3   : > { %v695_v19 = vsel %vm551_vm8, %v1211_v18, 0.0  ;;  %v1213_v20 = vpop.eup %1212 }
 0x3c4   : > { %696 = vadd.xlane.f32.xlu1 %v695_v19  ;;  %v689_v23 = vsel %vm551_vm8, %v1213_v20, 0.0 }
 0x3ca   : > { %v1197_v21 = vpop.permute.xlu0 %1196 }
 0x3cb   : > { %v1199_v22 = vunpack.i.h.bf16 %v1197_v21  ;;  %v1198_v24 = vunpack.i.l.bf16 %v1197_v21  ;;  %v938_v21 = vld [vmem:[%s1776_s8 + $0x38] sm:$0xff] }
 0x3cc   : > { %690 = vadd.xlane.f32.xlu1 %v689_v23  ;;  %955 = vmatpush.msrb.mxu0 %v938_v21 }
 0x3cd   : > { %753 = vmatpush.msrb.mxu3 %v1198_v24  ;;  %779 = vmatpush.msra.mxu1 %v1199_v22  ;;  %v937_v22 = vld [vmem:[%s1776_s8 + $0x30] sm:$0xff]  ;;  %v936_v24 = vld [vmem:[%s1776_s8 + $0x28] sm:$0xff] }
 0x3ce   : > { %956 = vmatpush.msrb.mxu0 %v937_v22 }
 0x3cf   : > { %922 = vmatpush.msra.mxu3 %v902_v13 }
 0x3d0   : > { %957 = vmatpush.msrb.mxu0 %v936_v24 }
 0x3d5   : > { %v670_v25 = vpop.xlane.xlu2 %669 }
 0x3d6   : > { %v676_v26 = vsub.f32 %v660_v6, %v670_v25 }
 0x3d8   : > { %v682_v27 = vmul.f32 1.442695, %v676_v26  ;;  %v935_v26 = vld [vmem:[%s1776_s8 + $0x20] sm:$0xff] }
 0x3d9   : > { %958 = vmatpush.msrb.mxu0 %v935_v26 }
 0x3da   : > { %1214 = vpow2.f32 %v682_v27 }
 0x3dd   : > { %v664_v28 = vpop.xlane.xlu2 %663 }
 0x3de   : > { %v674_v29 = vsub.f32 %v658_v10, %v664_v28 }
 0x3e0   : > { %v1215_v30 = vpop.eup %1214  ;;  %v678_v31 = vmul.f32 1.442695, %v674_v29  ;;  %v934_v29 = vld [vmem:[%s1776_s8 + $0x18] sm:$0xff] }
 0x3e1   : > { %v692_v32 = vsel %vm551_vm8, %v1215_v30, 0.0  ;;  %959 = vmatpush.msrb.mxu0 %v934_v29 }
 0x3e2   : > { %1216 = vpow2.f32 %v678_v31  ;;  %693 = vadd.xlane.f32.xlu2 %v692_v32 }
 0x3e8   : > { %v1217_v33 = vpop.eup %1216 }
 0x3e9   : > { %v686_v34 = vsel %vm551_vm8, %v1217_v33, 0.0 }
 0x3ea   : > { %687 = vadd.xlane.f32.xlu1 %v686_v34 }
 0x3fa   : > { %784 = vrot.lane.b32.xlu2 %v1628_v50, %s1387_s23 }
 0x403   : > { %706 = vrot.lane.b32.xlu1 %v1622_v48, %s1387_s23  ;;  %s980_s23 = scalar_lea.hbm %s1804_s22, %s1121_s27 }
 0x437   : > { %v697_v35 = vpop.xlane.xlu1 %696 }
 0x43f   : > { %v691_v36 = vpop.xlane.xlu1 %690 }
 0x440   : > { %1218 = vrcp.f32 %v691_v36 }
 0x446   : > { %v1219_v38 = vpop.eup %1218 }
 0x447   : > { %v703_v39 = vmul.f32 %v1219_v38, %v1213_v20 }
 0x449   : > { %1114 = vmatmul.msk.f32.vlgmr.msrb.gmra.mxu3 %vm551_vm8, %v703_v39 }
 0x455   : > { %v694_v40 = vpop.xlane.xlu2 %693 }
 0x456   : > { %1220 = vrcp.f32 %v694_v40 }
 0x457   : > { %1222 = vrcp.f32 %v697_v35 }
 0x45c   : > { %v1221_v41 = vpop.eup %1220 }
 0x45d   : > { %v704_v42 = vmul.f32 %v1221_v41, %v1215_v30  ;;  %v785_v44 = vpop.permute.xlu2 %784  ;;  %v1223_v45 = vpop.eup %1222 }
 0x45e   : > { %805 = vmatpush.msrb.mxu1 %v785_v44  ;;  %v705_v46 = vmul.f32 %v1223_v45, %v1211_v18  ;;  %v688_v47 = vpop.xlane.xlu1 %687 }
 0x45f   : > { %1115 = vmatmul.msk.f32.vlgmr.msra.gmra.mxu1 %vm551_vm8, %v704_v42  ;;  %1224 = vrcp.f32 %v688_v47 }
 0x465   : > { %v1225_v48 = vpop.eup %1224 }
 0x466   : > { %v702_v50 = vmul.f32 %v1225_v48, %v1217_v33  ;;  %v933_v48 = vld [vmem:[%s1776_s8 + $0x10] sm:$0xff] }
 0x467   : > { %1116 = vmatmul.msk.f32.vlgmr.msrb.gmra.mxu1 %vm551_vm8, %v705_v46  ;;  %960 = vmatpush.msrb.mxu0 %v933_v48 }
 0x475   : > { %v707_v49 = vpop.permute.xlu1 %706 }
 0x476   : > { %727 = vmatpush.msrb.mxu2 %v707_v49  ;;  %v932_v49 = vld [vmem:[%s1776_s8 + $0x8] sm:$0xff] }
 0x477   : > { %1113 = vmatmul.msk.f32.vlgmr.msrb.gmra.mxu2 %vm551_vm8, %v702_v50  ;;  %961 = vmatpush.msrb.mxu0 %v932_v49 }
 0x478   : > { %850 = vmatpush.msra.mxu2 %v830_v54 }
 0x47a   : > { %851 = vmatpush.msra.mxu2 %v829_v55 }
 0x47c   : > { %852 = vmatpush.msra.mxu2 %v828_v56 }
 0x47e   : > { %853 = vmatpush.msra.mxu2 %v827_v57 }
 0x4cc   : > { %v755_v51 = vpop.f32.mrf.mxu3 }
 0x4cd   : > { %811 = vrot.lane.b32.xlu0 %v755_v51, %s1388_s20  ;;  %s456_s20 = scalar_lea.vmem [#allocation9], %s1569_s17  ;;  %s1325_s17 = scalar_lea.hbm %s1804_s22, 16 }
 0x4dc   : > { %v781_v52 = vpop.f32.mrf.mxu1 }
 0x4dd   : > { %815 = vrot.lane.b32.xlu2 %v781_v52, %s1389_s28  ;;  %s982_s28 = sshll.u32 %s456_s20, 4  ;;  %s983_s28 = int_to_ptr.vmem [resolvable:$true] %s982_s28 }
 0x4e4   : > { %v807_v53 = vpop.f32.mrf.mxu1 }
 0x4e5   : > { %819 = vrot.lane.b32.xlu0 %v807_v53, %s1390_s14  ;;  %v1203_v53 = vld [vmem:[%s1777_s9] ss:$0 sm:$0xff]  ;;  %s984_s14 = sshll.u32 %s980_s23, 4  ;;  %s985_s14 = int_to_ptr.hbm [resolvable:$true] %s984_s14 }
 0x4e6   : > { %s1319_s12 = sshra.s32 %s985_s14, 4  ;;  %s1320_s12 = int_to_ptr.hbm [resolvable:$true] %s1319_s12 }
 0x4e7   : > { %s1321_s24 = scalar_lea.hbm %s1320_s12, 8  ;;  %p1326_p2 = scmp.lt.s32.totalorder %s1320_s12, %s1804_s22 }
 0x4e8   : > { %p1322_p1 = scmp.ne.s32.totalorder %s1320_s12, %s1321_s24  ;;  %p1327_p11 = scmp.lt.s32.totalorder %s1325_s17, %s1321_s24 }
 0x4ea   : > { %p1323_p4 = pnand %p1322_p1, %p1517_p3  ;;  %p1328_p10 = por %p1327_p11, %p1326_p2 }
 0x4ec   : > { %p1324_p8 = pneg %p1323_p4 }
 0x4ee   : > { %p1329_p12 = pnand %p1328_p10, %p1324_p8 }
 0x4fa   : > { %v729_v59 = vpop.f32.mrf.mxu2 }
 0x537   : > { %v816_v61 = vpop.permute.xlu2 %815 }
 0x53f   : > { %v812_v58 = vpop.permute.xlu0 %811 }
 0x540   : > { %v822_v60 = vsel %vm551_vm8, %v729_v59, %v812_v58 }
 0x541   : > { %v824_v62 = vsel %vm823_vm9, %v822_v60, %v816_v61 }
 0x557   : > { %v820_v63 = vpop.permute.xlu0 %819 }
 0x558   : > { %v826_v1 = vsel %vm825_vm10, %v824_v62, %v820_v63 }
 0x559   : > { %1117 = vmatmul.msk.f32.vlgmr.msra.gmra.mxu2 %vm461_vm0, %v826_v1 }
 0x5dc   : > { %v855_v3 = vpop.f32.mrf.mxu2 }
 0x5dd   : > { %v856_v4 = vadd.f32 %v1201_v2, %v855_v3 }
 0x5df   : > { %v1678_v5 = vadd.f32 %v856_v4, %v1587_v0  ;;  %v901_v0 = vld [vmem:[%s1774_s6 + $0x10] sm:$0xff] }
 0x5e0   : > { %923 = vmatpush.msra.mxu3 %v901_v0 }
 0x5e1   : > { %v859_v6 = vsel %vm461_vm0, %v1678_v5, 0.0 }
 0x5e2   : > { %860 = vadd.xlane.f32.xlu2 %v859_v6  ;;  %924 = vmatpush.msra.mxu3 %v900_v14 }
 0x655   : > { %v861_v7 = vpop.xlane.xlu2 %860 }
 0x656   : > { %v862_v9 = vmul.f32 %v861_v7, %v1591_v8  ;;  %v899_v8 = vld [vmem:[%s1774_s6] sm:$0xff] }
 0x657   : > { %925 = vmatpush.msra.mxu3 %v899_v8 }
 0x658   : > { %v863_v10 = vsub.f32 %v1678_v5, %v862_v9 }
 0x65a   : > { %v864_v11 = vmul.f32 %v863_v10, %v863_v10  ;;  %v881_v42 = vmul.f32 %v863_v10, %v491_v37  ;;  %v931_v37 = vld [vmem:[%s1776_s8] sm:$0xff] }
 0x65b   : > { %962 = vmatpush.msrb.mxu0 %v931_v37 }
 0x65c   : > { %v865_v12 = vsel %vm461_vm0, %v864_v11, 0.0 }
 0x65d   : > { %866 = vadd.xlane.f32.xlu0 %v865_v12 }
 0x6d0   : > { %v867_v15 = vpop.xlane.xlu0 %866 }
 0x6d1   : > { %v868_v16 = vmul.f32 0.032258064, %v867_v15 }
 0x6d3   : > { %1226 = vrsqrt.f32 %v868_v16  ;;  %vm876_vm11 = vcmp.eq.f32.partialorder %v868_v16, inf  ;;  %v879_v28 = vand.u32 2147483648, %v868_v16  ;;  %vm878_vm12 = vcmp.eq.f32.partialorder %v868_v16, 0.0 }
 0x6d9   : > { %v1227_v17 = vpop.eup %1226 }
 0x6da   : > { %v870_v18 = vmul.f32 %v1227_v17, %v868_v16 }
 0x6dc   : > { %v871_v19 = vmul.f32 %v1227_v17, %v870_v18 }
 0x6de   : > { %v872_v20 = vmul.f32 0.5, %v871_v19 }
 0x6e0   : > { %v873_v23 = vsub.f32 1.5, %v872_v20 }
 0x6e2   : > { %v874_v25 = vmul.f32 %v1227_v17, %v873_v23 }
 0x6e4   : > { %v875_v27 = vmul.f32 %v874_v25, %v868_v16 }
 0x6e6   : > { %v877_v30 = vsel %vm876_vm11, %v868_v16, %v875_v27 }
 0x6e7   : > { %v880_v31 = vsel %vm878_vm12, %v879_v28, %v877_v30 }
 0x6e8   : > { %v882_v32 = vadd.f32 1e-06, %v880_v31 }
 0x6ea   : > { %1228 = vrcp.f32 %v882_v32  ;;  %v894_v36 = vand.u32 2147483648, %v882_v32  ;;  %v892_v39 = vand.u32 2147483647, %v882_v32  ;;  %vm888_vm14 = vweird.f32 %v882_v32 }
 0x6ec   : > { %v895_v41 = vor.u32 1.1754944e-38, %v894_v36  ;;  %vm893_vm1 = vcmp.eq.f32.partialorder %v892_v39, 8.507059e+37 }
 0x6f0   : > { %v1229_v33 = vpop.eup %1228 }
 0x6f1   : > { %v884_v34 = vmul.f32 %v1229_v33, %v882_v32  ;;  %vm889_vm13 = vweird.f32 %v1229_v33 }
 0x6f2   : > { %vm890_vm15 = vmor %vm888_vm14, %vm889_vm13 }
 0x6f3   : > { %v885_v35 = vsub.f32 1.0, %v884_v34 }
 0x6f5   : > { %v886_v38 = vmul.f32 %v1229_v33, %v885_v35 }
 0x6f7   : > { %v887_v40 = vadd.f32 %v1229_v33, %v886_v38 }
 0x6f9   : > { %v891_v44 = vsel %vm890_vm15, %v1229_v33, %v887_v40 }
 0x6fa   : > { %v896_v45 = vsel %vm893_vm1, %v895_v41, %v891_v44 }
 0x6fb   : > { %v897_v46 = vmul.f32 %v896_v45, %v881_v42 }
 0x6fd   : > { %v898_v47 = vadd.f32 %v897_v46, %v509_v43  ;;  %v1202_v43 = vld [vmem:[%s1775_s7] ss:$0 sm:$0xff] }
 0x6ff   : > { %1118 = vmatmul.msk.f32.vlgmr.msra.gmra.mxu3 %vm461_vm0, %v898_v47 }
 0x782   : > { %v927_v50 = vpop.f32.mrf.mxu3 }
 0x783   : > { %v928_v51 = vadd.f32 %v1202_v43, %v927_v50 }
 0x785   : > { %v930_v52 = vmax.f32 %v928_v51, 0.0 }
 0x787   : > { %1119 = vmatmul.msk.f32.vlgmr.msrb.gmra.mxu0 %vm943_vm2, %v930_v52 }
 0x804   : > { %v964_v54 = vpop.f32.mrf.mxu0 }
 0x805   : > { %v965_v55 = vadd.f32 %v1203_v53, %v964_v54 }
 0x807   : > { %v967_v56 = vadd.f32 %v965_v55, %v1678_v5 }
 0x809   : > { %968 = vst.msk [vmem:[%s456_s20] sm:$0xff] %vm461_vm0, %v967_v56 }
 0x80a   : > { %1332 = shalt.err (!%p1329_p12)
}
 0x80b   : > { %1132 = dma.vmem_to_hbm [thread:$0]  (%p1517_p3), %s983_s28, 128, %s985_s14, %s970_s21  }
 0x80c PF: > { %s1806_s10 = sld [smem:[#allocation14_spill]] }
 0x80d   : > { %s1808_s13 = sld [smem:[#allocation16_spill]] }
 0x812   : > { %s996_s19 = sand.u32 1, %s1806_s10  }
 0x813   : > { %p1809_p0 = scmp.ge.s32.totalorder %s1808_s13, 2  ;;  %s997_s29 = scalar_lea.sflag [#allocation4], %s996_s19 }
 0x815   : > { %p1146_p9 = pnand %p1809_p0, %p1486_p6 }
 0x817   : > { %p1147_p13 = pneg %p1146_p9 }
 0x819   : > { %1362 = dma.done.wait (%p1147_p13), %s997_s29, 128  }
 0x81a   : > { %1364 = vsyncadd (%p1147_p13), %s997_s29, 4294967168  ;;  %s1810_s20 = sld [smem:[#allocation18_spill]]  ;;  %s1813_s17 = smov %s1371_s18 }
 0x81b   : > { %s1811_s16 = sld [smem:[#allocation15_spill]] }
 0x81c   : > { %s1812_s19 = sld [smem:[#allocation19_spill]] }
 0x820   : > { %p28_p5 = scmp.ge.s32.totalorder %s1810_s20, 4  }
 0x821   : > { %s1814_s18 = smov %s1811_s16 }
 0x822   :  { %30 = sbr.rel (!%p28_p5) target bundleno = 11 (0xb), region = 127 }
 0x827   :  { %1003 = vsyncpa [#allocation3], 1 }
 0x828   :  { %1005 = vsyncpa [#allocation3 + $0x1], 1 }
 0x829   :  { %1006 = vsyncpa [#allocation7], 1 }
 0x82a   :  { %1008 = vsyncpa [#allocation7 + $0x1], 1 }
 0x82b   :  { %1009 = vsyncpa [#allocation4], 1 }
 0x82c   :  { %1011 = vsyncpa [#allocation4 + $0x1], 1 }
 0x82d   :  { %1012 = vsyncpa [#allocation5], 1 }
 0x82e   :  { %1014 = vsyncpa [#allocation5 + $0x1], 1 }

</bundles_post_ra>
